<compile_context>
chip_gen: v7x
topology: tpu7x:2x2x1
jax: 0.10.0
libtpu: 0.0.40
codegen_flags: <defaults>
</compile_context>

<pallas_src>
import functools

import jax
import jax.numpy as jnp
from jax.experimental import pallas as pl
from jax.experimental.pallas import tpu as pltpu


def _bernoulli_head_kernel(x_ref, w_ref, b_ref, logits_ref, ent_ref):
    # logits^T [O, tb] = W [O, in] @ x^T [in, tb] + b [O, 1]   (MXU, f32 acc)
    z = jnp.dot(w_ref[...], x_ref[...].T,
                preferred_element_type=jnp.float32) + b_ref[...]
    logits_ref[...] = z.astype(logits_ref.dtype)

    # Bernoulli entropy per element directly from logits, one exp + one log1p:
    #   e = exp(-|z|);  H = log1p(e) + |z| * e / (1 + e)
    az = jnp.abs(z)
    e = jnp.exp(-az)
    inv = pl.reciprocal(1.0 + e, approx=True)        # EUP slot, nearly free
    ent_elem = jnp.log1p(e) + az * e * inv
    # FixedBernoulli.entropy() sums over the action axis (sublane axis here).
    ent_ref[...] = jnp.sum(ent_elem, axis=0, keepdims=True)   # [1, tb]


def _pick_tile_b(batch, num_in, num_out, requested=None):
    """Batch tile: lane-aligned, sized from a double-buffered VMEM budget."""
    if requested is not None:
        tb = requested
    else:
        # Double-buffered per-row VMEM bytes: x tile + logits^T tile + entropy.
        bytes_per_row = 2 * 4 * (num_in + num_out + 1)
        budget = 8 << 20  # fits v5e's 16 MiB default scoped VMEM with headroom
        tb = max(128, min(8192, budget // bytes_per_row))
        tb -= tb % 128    # multiple of 128 -> unmasked lane-dense stores
    return batch if batch <= tb else tb


@functools.partial(jax.jit, static_argnames=("tile_b",))
def bernoulli_head(x, w, b, *, tile_b=None):
    """x: [B, num_in], w: [num_out, num_in], b: [num_out, 1].

    Returns (logits_T [num_out, B], entropy_sum [1, B])."""
    B, num_in = x.shape
    num_out = w.shape[0]

    tb = _pick_tile_b(B, num_in, num_out, tile_b)
    grid = (pl.cdiv(B, tb),)

    out_shapes = (
        jax.ShapeDtypeStruct((num_out, B), jnp.float32),  # logits^T
        jax.ShapeDtypeStruct((1, B), jnp.float32),        # entropy (sum over O)
    )

    grid_spec = pl.GridSpec(
        grid=grid,
        in_specs=[
            # x: tiled over batch (sublane axis of the input tile).
            pl.BlockSpec((tb, num_in), lambda i: (i, 0)),
            # Weights / bias: grid-invariant -> DMA'd once, stay resident.
            pl.BlockSpec((num_out, num_in), lambda i: (0, 0)),
            pl.BlockSpec((num_out, 1), lambda i: (0, 0)),
        ],
        out_specs=[
            # batch on the lane axis -> lane-dense stores.
            pl.BlockSpec((num_out, tb), lambda i: (0, i)),
            pl.BlockSpec((1, tb), lambda i: (0, i)),
        ],
    )

    return pl.pallas_call(
        _bernoulli_head_kernel,
        out_shape=out_shapes,
        grid_spec=grid_spec,
        compiler_params=pltpu.CompilerParams(
            dimension_semantics=("parallel",),
            vmem_limit_bytes=32 << 20),
    )(x, w, b)


class FixedBernoulliJax:
    """Mirror of FixedBernoulli; hot tensors precomputed by the Pallas kernel.

    Stores logits in the transposed [O, B] kernel layout; [B, O] views and
    probs/mode are derived lazily (layout plumbing, not recomputation of the
    hot path)."""

    def __init__(self, logits_t, entropy_row):
        self._logits_t = logits_t          # [O, B]
        self._entropy = entropy_row[0]     # [B]
        self._logits = None
        self._probs = None

    @property
    def logits(self):
        if self._logits is None:
            self._logits = self._logits_t.T           # [B, O]
        return self._logits

    @property
    def probs(self):
        if self._probs is None:
            self._probs = jax.nn.sigmoid(self.logits)
        return self._probs

    def mode(self):
        # (probs > 0.5) <=> (logits > 0)
        return jnp.where(self.logits > 0.0, 1.0, 0.0).astype(jnp.float32)

    def entropy(self):
        # torch: element-wise entropy summed over the last axis -> [B]
        return self._entropy

    def log_probs(self, actions):
        # bernoulli log_prob(actions) summed over features -> [B, 1]
        z = self.logits
        logp = -jax.nn.softplus(-z)       # log p
        log1mp = -jax.nn.softplus(z)      # log (1 - p)
        lp = actions * logp + (1.0 - actions) * log1mp
        return jnp.sum(lp.reshape(actions.shape[0], -1), axis=-1, keepdims=True)

    def sample(self, key):
        return jax.random.bernoulli(key, self.probs).astype(jnp.float32)


class BernoulliHead:
    """JAX equivalent of the PyTorch `Bernoulli` nn.Module."""

    def __init__(self, num_inputs, num_outputs, key):
        # orthogonal weight init (gain=1), zero bias — same as the torch init_
        w = jax.nn.initializers.orthogonal()(
            key, (num_outputs, num_inputs), jnp.float32)
        self.w = jnp.asarray(w)                            # [out, in] (torch layout)
        self.b = jnp.zeros((num_outputs, 1), jnp.float32)  # [out, 1]

    def __call__(self, x):
        logits_t, ent = bernoulli_head(x, self.w, self.b)
        return FixedBernoulliJax(logits_t, ent)


if __name__ == "__main__":
    key = jax.random.PRNGKey(0)
    k_w, k_x, k_a = jax.random.split(key, 3)

    B, NUM_IN, NUM_OUT = 8, 32, 8
    head = BernoulliHead(NUM_IN, NUM_OUT, k_w)
    x = jax.random.normal(k_x, (B, NUM_IN), jnp.float32)

    dist = head(x)
    jax.block_until_ready((dist.logits, dist.entropy()))

    # plain-JAX reference
    ref_logits = x @ head.w.T + head.b.T
    ref_probs = jax.nn.sigmoid(ref_logits)
    ref_ent = jnp.sum(
        ref_probs * jax.nn.softplus(-ref_logits)
        + (1 - ref_probs) * jax.nn.softplus(ref_logits), axis=-1)

    assert jnp.allclose(dist.logits, ref_logits, atol=1e-5)
    assert jnp.allclose(dist.probs, ref_probs, atol=1e-5)
    assert jnp.allclose(dist.mode(), (ref_probs > 0.5).astype(jnp.float32))
    # entropy path uses the approx EUP reciprocal -> slightly looser tolerance
    assert jnp.allclose(dist.entropy(), ref_ent, atol=1e-2)

    # log_probs sanity (plain-JAX glue)
    acts = (jax.random.uniform(k_a, (B, NUM_OUT)) > 0.5).astype(jnp.float32)
    ref_lp = jnp.sum(acts * jnp.log(ref_probs) + (1 - acts) * jnp.log1p(-ref_probs),
                     axis=-1, keepdims=True)
    assert jnp.allclose(dist.log_probs(acts), ref_lp, atol=1e-4)

    # multi-tile / ragged-edge path: force a small lane-aligned tile so grid > 1
    B2 = 300
    x2 = jax.random.normal(k_a, (B2, NUM_IN), jnp.float32)
    logits2_t, ent2 = bernoulli_head(x2, head.w, head.b, tile_b=128)
    jax.block_until_ready(logits2_t)
    ref2 = x2 @ head.w.T + head.b.T
    assert jnp.allclose(logits2_t.T, ref2, atol=1e-4)

    print("KERNEL_OK")
</pallas_src>

<mosaic_0001>
module attributes {stable_mosaic.version = 11 : i64} {
  func.func @_bernoulli_head_kernel(%arg0: i32, %arg1: memref<8x32xf32, #tpu.memory_space<vmem>>, %arg2: memref<8x32xf32, #tpu.memory_space<vmem>>, %arg3: memref<8x1xf32, #tpu.memory_space<vmem>>, %arg4: memref<8x8xf32, #tpu.memory_space<vmem>>, %arg5: memref<1x8xf32, #tpu.memory_space<vmem>>) attributes {dimension_semantics = [#tpu.dimension_semantics<parallel>], iteration_bounds = array<i64: 1>, scalar_prefetch = 0 : i64, scratch_operands = 0 : i64, tpu.core_type = #tpu.core_type<tc>, window_params = [{transform_indices = @transform_0, window_bounds = array<i64: 8, 32>}, {pipeline_mode = #tpu.pipeline_mode<synchronous>, transform_indices = @transform_1, window_bounds = array<i64: 8, 32>}, {pipeline_mode = #tpu.pipeline_mode<synchronous>, transform_indices = @transform_2, window_bounds = array<i64: 8, 1>}, {transform_indices = @transform_3, window_bounds = array<i64: 8, 8>}, {transform_indices = @transform_4, window_bounds = array<i64: 1, 8>}]} {
    %c0 = arith.constant 0 : index
    %c0_0 = arith.constant 0 : index
    %0 = vector.load %arg2[%c0, %c0_0] : memref<8x32xf32, #tpu.memory_space<vmem>>, vector<8x32xf32>
    %c0_1 = arith.constant 0 : index
    %c0_2 = arith.constant 0 : index
    %1 = vector.load %arg1[%c0_1, %c0_2] : memref<8x32xf32, #tpu.memory_space<vmem>>, vector<8x32xf32>
    %2 = tpu.transpose %1, [1, 0] : vector<8x32xf32> -> vector<32x8xf32>
    %cst = arith.constant dense<0.000000e+00> : vector<8x8xf32>
    %3 = tpu.matmul %0, %2, %cst {dimension_numbers = #tpu.dot_dimension_numbers<[1], [0], [0], [1], [0, 0, 1, 1], [], []>} : vector<8x32xf32>, vector<32x8xf32>, vector<8x8xf32> -> vector<8x8xf32>
    %c0_3 = arith.constant 0 : index
    %c0_4 = arith.constant 0 : index
    %4 = vector.load %arg3[%c0_3, %c0_4] : memref<8x1xf32, #tpu.memory_space<vmem>>, vector<8x1xf32>
    %5 = vector.broadcast %4 : vector<8x1xf32> to vector<8x8xf32>
    %6 = arith.addf %3, %5 : vector<8x8xf32>
    %c0_5 = arith.constant 0 : index
    %c0_6 = arith.constant 0 : index
    %7 = vector.load %arg4[%c0_5, %c0_6] : memref<8x8xf32, #tpu.memory_space<vmem>>, vector<8x8xf32>
    tpu.vector_store %arg4[%c0_5, %c0_6], %6 {strides = array<i32>} : memref<8x8xf32, #tpu.memory_space<vmem>>, vector<8x8xf32>,
    %8 = math.absf %6 : vector<8x8xf32>
    %cst_7 = arith.constant 0.000000e+00 : f32
    %9 = vector.broadcast %cst_7 : f32 to vector<8x8xf32>
    %10 = arith.subf %9, %8 : vector<8x8xf32>
    %11 = math.exp %10 : vector<8x8xf32>
    %cst_8 = arith.constant 1.000000e+00 : f32
    %12 = vector.broadcast %cst_8 : f32 to vector<8x8xf32>
    %13 = arith.addf %12, %11 : vector<8x8xf32>
    %14 = tpu.reciprocal %13 {approx = true} : vector<8x8xf32> -> vector<8x8xf32>
    %15 = math.log1p %11 : vector<8x8xf32>
    %16 = arith.mulf %8, %11 : vector<8x8xf32>
    %17 = arith.mulf %16, %14 : vector<8x8xf32>
    %18 = arith.addf %15, %17 : vector<8x8xf32>
    %cst_9 = arith.constant dense<0.000000e+00> : vector<8xf32>
    %19 = vector.multi_reduction <add>, %18, %cst_9 [0] : vector<8x8xf32> to vector<8xf32>
    %20 = vector.shape_cast %19 : vector<8xf32> to vector<1x8xf32>
    %c0_10 = arith.constant 0 : index
    %c0_11 = arith.constant 0 : index
    %21 = vector.load %arg5[%c0_10, %c0_11] : memref<1x8xf32, #tpu.memory_space<vmem>>, vector<1x8xf32>
    tpu.vector_store %arg5[%c0_10, %c0_11], %20 {strides = array<i32>} : memref<1x8xf32, #tpu.memory_space<vmem>>, vector<1x8xf32>,
    return
  }
  func.func @transform_0(%arg0: i32) -> (i32, i32) {
    %c0_i32 = arith.constant 0 : i32
    %c0_i32_0 = arith.constant 0 : i32
    return %arg0, %c0_i32 : i32, i32
  }
  func.func @transform_1(%arg0: i32) -> (i32, i32) {
    %c0_i32 = arith.constant 0 : i32
    %c0_i32_0 = arith.constant 0 : i32
    %c0_i32_1 = arith.constant 0 : i32
    return %c0_i32, %c0_i32_0 : i32, i32
  }
  func.func @transform_2(%arg0: i32) -> (i32, i32) {
    %c0_i32 = arith.constant 0 : i32
    %c0_i32_0 = arith.constant 0 : i32
    %c0_i32_1 = arith.constant 0 : i32
    return %c0_i32, %c0_i32_0 : i32, i32
  }
  func.func @transform_3(%arg0: i32) -> (i32, i32) {
    %c0_i32 = arith.constant 0 : i32
    %c0_i32_0 = arith.constant 0 : i32
    return %c0_i32, %arg0 : i32, i32
  }
  func.func @transform_4(%arg0: i32) -> (i32, i32) {
    %c0_i32 = arith.constant 0 : i32
    %c0_i32_0 = arith.constant 0 : i32
    return %c0_i32, %arg0 : i32, i32
  }
}

</mosaic_0001>

<bundles_post_ra>
// kernel: bernoulli_head.1
= control target key start
LH: loop header
LB: loop body
LE: loop exit
PB: predicated region body
PF: predicated region fallthrough
CT: control target
= control target key end

     0   :  { %10 = vsyncpa [#allocation3], 0  ;;  %s342_s0 = inlined_call_operand.vmem [shape: f32[8,32], index: 0, kind: input, shape index: {}]   ;;  %s343_s1 = inlined_call_operand.hbm [shape: f32[8,32], index: 1, kind: input, shape index: {}]   ;;  %s344_s2 = inlined_call_operand.vmem [shape: f32[8,1], index: 2, kind: input, shape index: {}]   ;;  %s345_s3 = inlined_call_operand.hbm [shape: f32[8,8], index: 3, kind: output, shape index: {0}]   ;;  %s346_s4 = inlined_call_operand.hbm [shape: f32[1,8], index: 4, kind: output, shape index: {1}]  }
   0x1   :  { %11 = vsyncpa [#allocation4], 0 }
   0x2   :  { %12 = vsyncpa [#allocation7], 0  ;;  %s267_s15 = smov [#allocation2]   ;;  %s195_s19 = scalar_lea.hbm %s343_s1, 128 }
   0x3   :  { %s21_s16 = sshll.u32 %s267_s15, 4  ;;  %p196_p0 = scmp.ne.s32.totalorder %s343_s1, %s195_s19  ;;  %s22_s16 = int_to_ptr.vmem [resolvable:$true] %s21_s16 }
   0x4   :  { %p199_p1 = scmp.lt.u32.totalorder %s195_s19, %s343_s1 }
   0x6   :  { %p201_p2 = pnand %p199_p1, %p196_p0 }
   0x8   :  { %204 = shalt.err (!%p201_p2)
}
   0x9   :  { %s205_s24 = scalar_lea.vmem %s22_s16, 128  ;;  %p210_p4 = scmp.lt.s32.totalorder %s22_s16, %s22_s16 }
   0xa   :  { %p206_p3 = scmp.ne.s32.totalorder %s22_s16, %s205_s24  ;;  %p211_p5 = scmp.lt.s32.totalorder %s205_s24, %s205_s24 }
   0xc   :  { %p212_p6 = por %p211_p5, %p210_p4 }
   0xe   :  { %p213_p7 = pnand %p212_p6, %p206_p3 }
  0x10   :  { %216 = shalt.err (!%p213_p7)
}
  0x11   :  { %24 = dma.hbm_to_vmem [thread:$0]  %s343_s1, 128, %s22_s16, [#allocation3]  }
  0x12   :  { %261 = dma.done.wait [#allocation3], 128  }
  0x13   :  { %262 = vsyncadd [#allocation3], 4294967168  ;;  %v268_v0 = vmov 0.0   ;;  %vm269_vm0 = vmmov 0   ;;  %v270_v1 = vmov 0   ;;  %vm38_vm1 = vcmask 261120  }
  0x14   :  { %177 = vmatprep.subr.mxu0 %v268_v0  ;;  %179 = vmatprep.mubr.msk.f32.mxu0 %vm269_vm0, %v268_v0  ;;  %v31_v2 = vld [vmem:[%s342_s0] sm:$0xff]  ;;  %s271_s1 = smov [#allocation5]   ;;  %vm115_vm2 = vcmask 64512  }
  0x15   :  { %188 = vset.pattern.permute.xlu0 %v270_v1  ;;  %v32_v3 = vld [vmem:[%s344_s2] sm:$0xff]  ;;  %178 = vmatpush3.xpose.msk.msra.mxu0 %vm38_vm1, %v31_v2  ;;  %s150_s5 = sshll.u32 %s271_s1, 4  ;;  %s151_s5 = int_to_ptr.vmem [resolvable:$true] %s150_s5 }
  0x16   :  { %v30_v4 = vld [vmem:[#allocation2] sm:$0xff]  ;;  %35 = vperm.xlu0 %188, %v32_v3   ;;  %s217_s0 = scalar_lea.vmem %s151_s5, 128  ;;  %p222_p9 = scmp.lt.s32.totalorder %s151_s5, %s151_s5 }
  0x17   :  { %p218_p8 = scmp.ne.s32.totalorder %s151_s5, %s217_s0  ;;  %p223_p10 = scmp.lt.s32.totalorder %s217_s0, %s217_s0 }
  0x18   :  { %180 = vmatmul.mubr.msk.f32.vlgmr.msra.gmra.mrb[0].mxu0 %vm38_vm1, %v30_v4 }
  0x19   :  { %p224_p11 = por %p223_p10, %p222_p9 }
  0x1b   :  { %p225_p12 = pnand %p224_p11, %p218_p8 }
  0x95   :  { %v36_v5 = vpop.permute.xlu0 %35 }
  0xeb   :  { %v111_v6 = vpop.f32.mrb[0].mxu0 }
  0xec   :  { %v112_v7 = vadd.f32 %v111_v6, %v36_v5  ;;  %v181_v8 = vpop.f32.mrb[1].mxu0 }
  0xee   :  { %v117_v9 = vand.u32 2147483647, %v112_v7  ;;  %116 = vst.msk [vmem:[#allocation5] sm:$0xff] %vm115_vm2, %v112_v7 }
  0xef   :  { %228 = shalt.err (!%p225_p12)
}
  0xf0   :  { %s229_s7 = scalar_lea.hbm %s345_s3, 128 }
  0xf1   :  { %p230_p13 = scmp.ne.s32.totalorder %s345_s3, %s229_s7  ;;  %p233_p0 = scmp.lt.u32.totalorder %s229_s7, %s345_s3 }
  0xf3   :  { %p235_p1 = pnand %p233_p0, %p230_p13 }
  0xf5   :  { %238 = shalt.err (!%p235_p1)
}
  0xf6   :  { %153 = dma.vmem_to_hbm [thread:$0]  %s151_s5, 128, %s345_s3, [#allocation4]   ;;  %v118_v10 = vsub.f32 0.0, %v117_v9  ;;  %vm142_vm4 = vcmask 57344  }
  0xf7   :  { %s272_s3 = smov [#allocation6]  }
  0xf8   :  { %v119_v11 = vmul.f32 1.442695, %v118_v10  ;;  %s160_s14 = sshll.u32 %s272_s3, 4  ;;  %s161_s14 = int_to_ptr.vmem [resolvable:$true] %s160_s14 }
  0xf9   :  { %s239_s15 = scalar_lea.vmem %s161_s14, 16  ;;  %s243_s16 = scalar_lea.vmem %s161_s14, 32 }
  0xfa   :  { %189 = vpow2.f32 %v119_v11  ;;  %p240_p2 = scmp.ne.s32.totalorder %s161_s14, %s239_s15  ;;  %p244_p3 = scmp.lt.s32.totalorder %s161_s14, %s161_s14 }
  0xfb   :  { %p245_p4 = scmp.lt.s32.totalorder %s243_s16, %s239_s15 }
  0xfd   :  { %p246_p5 = por %p245_p4, %p244_p3 }
  0xff   :  { %p247_p6 = pnand %p246_p5, %p240_p2 }
 0x104   :  { %v190_v12 = vpop.eup %189 }
 0x105   :  { %v121_v13 = vadd.f32 1.0, %v190_v12  ;;  %v126_v14 = vmul.f32 -0.5, %v190_v12  ;;  %v132_v16 = vmul.f32 %v190_v12, %v117_v9  ;;  %v129_v17 = vand.u32 2147483647, %v190_v12 }
 0x107   :  { %191 = vrcp.f32 %v121_v13  ;;  %v127_v15 = vadd.f32 1.0, %v126_v14  ;;  %vm130_vm3 = vcmp.lt.f32.partialorder %v129_v17, 0.0004427343 }
 0x108   :  { %193 = vlog2.f32 %v121_v13 }
 0x109   :  { %v128_v22 = vmul.f32 %v190_v12, %v127_v15 }
 0x111   :  { %v192_v18 = vpop.eup %191 }
 0x112   :  { %v194_v19 = vpop.eup %193  ;;  %v133_v20 = vmul.f32 %v192_v18, %v132_v16 }
 0x113   :  { %v125_v21 = vmul.f32 0.6931472, %v194_v19 }
 0x115   :  { %v131_v23 = vsel %vm130_vm3, %v128_v22, %v125_v21 }
 0x116   :  { %v134_v24 = vadd.f32 %v133_v20, %v131_v23 }
 0x118   :  { %v135_v25 = vsel %vm115_vm2, %v134_v24, 0.0 }
 0x119   :  { %v136_v26 = vrot.slane %v135_v25, 4 }
 0x11b   :  { %v137_v27 = vadd.f32 %v136_v26, %v135_v25 }
 0x11d   :  { %v138_v28 = vrot.slane %v137_v27, 2 }
 0x11f   :  { %v139_v29 = vadd.f32 %v138_v28, %v137_v27 }
 0x121   :  { %v140_v30 = vrot.slane %v139_v29, 1 }
 0x123   :  { %v141_v31 = vadd.f32 %v140_v30, %v139_v29 }
 0x125   :  { %143 = vst.msk [vmem:[#allocation6] sm:$0x1] %vm142_vm4, %v141_v31 }
 0x126   :  { %250 = shalt.err (!%p247_p6)
}
 0x127   :  { %s251_s19 = scalar_lea.hbm %s346_s4, 16 }
 0x128   :  { %p252_p7 = scmp.ne.s32.totalorder %s346_s4, %s251_s19  ;;  %p255_p8 = scmp.lt.u32.totalorder %s251_s19, %s346_s4 }
 0x12a   :  { %p257_p9 = pnand %p255_p8, %p252_p7 }
 0x12c   :  { %260 = shalt.err (!%p257_p9)
}
 0x12d   :  { %163 = dma.vmem_to_hbm [thread:$0]  %s161_s14, 16, %s346_s4, [#allocation7]  }
 0x12e   :  { %263 = dma.done.wait [#allocation4], 128  }
 0x12f   :  { %264 = vsyncadd [#allocation4], 4294967168 }
 0x130   :  { %265 = dma.done.wait [#allocation7], 16  }
 0x131   :  { %266 = vsyncadd [#allocation7], 4294967280 }
 0x132   :  { %170 = vsyncpa [#allocation3], 1 }
 0x133   :  { %171 = vsyncpa [#allocation4], 1 }
 0x134   :  { %172 = vsyncpa [#allocation7], 1 }

</bundles_post_ra>
